<compile_context>
chip_gen: v6e
topology: v6e:2x2x1
jax: 0.10.0
libtpu: 0.0.40
codegen_flags: <defaults>
</compile_context>

<pallas_src>
import jax
import jax.numpy as jnp
from jax.experimental import pallas as pl
from jax.experimental.pallas import tpu as pltpu


def _value_head_kernel(x_ref, w_ref, b_ref, o_ref):
    # x_ref: (TB, H) VMEM    w_ref: (1, H) VMEM (grid-resident)
    # b_ref: (1,)   SMEM f32 o_ref: (TB, 1) VMEM
    x = x_ref[...].astype(jnp.float32)          # upcast BEFORE multiply (v5e: no bf16 VPU)
    w = w_ref[...].astype(jnp.float32)          # (1, H) broadcasts over sublanes
    acc = jnp.sum(x * w, axis=-1, keepdims=True)       # (TB, 1), f32 accumulate on XLU
    o_ref[...] = (acc + b_ref[0]).astype(o_ref.dtype)


def _round_up(x, m):
    return ((x + m - 1) // m) * m


def value_head_forward(hidden_states, weight, bias, *, block_b=None):
    """Pallas implementation of ValueHead.forward.

    hidden_states: [B, S, H] or [B, H]
    weight:        [1, H]   (nn.Linear(hidden_size, 1).weight)
    bias:          [1]      (nn.Linear(hidden_size, 1).bias)
    returns:       [B, 1]   in hidden_states.dtype
    """
    out_dtype = hidden_states.dtype
    itemsize = jnp.dtype(hidden_states.dtype).itemsize
    B = hidden_states.shape[0]
    H = hidden_states.shape[-1]

    # Sublane packing multiple for the batch tile: 8 f32 / 16 bf16 / 32 int8-fp8.
    sub = max(8, 32 // itemsize)

    # VMEM budget: only x is double-buffered, so ~12 MiB/buffer is safe on every
    # generation once vmem_limit_bytes is raised explicitly (v5e default scoped
    # VMEM is only 16 MiB; v7x physical VMEM is 64 MiB, so cap the limit at 40 MiB).
    try:
        vmem_cap = getattr(pltpu.get_tpu_info(), "vmem_capacity_bytes",
                           64 * 1024 * 1024)
    except Exception:
        vmem_cap = 64 * 1024 * 1024          # conservative (v7x per-core VMEM)
    vmem_limit = min(40 * 1024 * 1024, (3 * vmem_cap) // 4)
    per_buffer_budget = min(12 * 1024 * 1024, vmem_limit // 3)

    if block_b is None:
        tb_vmem = per_buffer_budget // max(1, H * itemsize)
        tb_vmem = max(sub, (tb_vmem // sub) * sub)
        # Ensure >=4 tiles whenever B is splittable so the "parallel" batch axis
        # actually feeds both v7x TensorCores.
        tb_split = max(sub, _round_up(pl.cdiv(B, 4), sub))
        tb = min(tb_vmem, tb_split)
    else:
        tb = block_b
    if B <= tb:
        tb = B                      # single full-extent block is always legal
    grid = (pl.cdiv(B, tb),)        # ragged last tile: strictly row-wise op, so
                                    # OOB padding rows are never written back.

    w = weight.reshape(1, H)                       # lane-dense [1, H], VMEM-resident
    b = bias.reshape(1).astype(jnp.float32)        # scalar bias via SMEM

    cost = pl.CostEstimate(
        flops=2 * B * H,
        transcendentals=0,
        bytes_accessed=B * H * itemsize + H * itemsize
        + B * jnp.dtype(out_dtype).itemsize + 4,
    )

    def run(x):
        if x.ndim == 3:
            S = x.shape[1]
            # Fused hidden_states[:, -1, :]: seq dim squeezed, static block index S-1.
            # TODO(synk): consider pipeline_mode=pl.Buffered(3) here if xprof shows
            # exposed strided-gather DMA at step boundaries on v7x.
            x_spec = pl.BlockSpec((tb, None, H), lambda i: (i, S - 1, 0))
        else:
            x_spec = pl.BlockSpec((tb, H), lambda i: (i, 0))
        return pl.pallas_call(
            _value_head_kernel,
            out_shape=jax.ShapeDtypeStruct((B, 1), out_dtype),
            grid=grid,
            in_specs=[
                x_spec,
                pl.BlockSpec((1, H), lambda i: (0, 0)),               # weight: resident
                pl.BlockSpec(memory_space=pltpu.MemorySpace.SMEM),    # bias: SMEM scalar
            ],
            out_specs=pl.BlockSpec((tb, 1), lambda i: (i, 0)),
            compiler_params=pltpu.CompilerParams(
                dimension_semantics=("parallel",),    # batch tiles -> v7x 2 TCs
                vmem_limit_bytes=vmem_limit,
            ),
            cost_estimate=cost,
        )(x, w, b)

    if hidden_states.ndim == 3 and H * itemsize >= 512:
        # Fused last-token gather DMA: ~3x less HBM traffic than pre-slicing,
        # and each row's contiguous run is long enough for good HBM efficiency.
        try:
            return run(hidden_states)
        except Exception:
            pass  # conservative fallback for Mosaic versions rejecting the size-1 seq block
    if hidden_states.ndim == 3:
        # Small H (or fallback): contiguous XLA pre-slice beats a tiny strided gather.
        hidden_states = hidden_states[:, -1, :]
    return run(hidden_states)


if __name__ == "__main__":
    key = jax.random.PRNGKey(0)
    k_x, k_w, k_b, k_x2, k_x3 = jax.random.split(key, 5)

    # --- Small shapes consistent with the module: batch=2, seq=8, hidden=32 ---
    B, S, H = 2, 8, 32
    hidden_states = jax.random.normal(k_x, (B, S, H), dtype=jnp.float32)
    # nn.Linear(hidden_size, 1): weight [1, H], bias [1]
    weight = jax.random.normal(k_w, (1, H), dtype=jnp.float32) * 0.02
    bias = jax.random.normal(k_b, (1,), dtype=jnp.float32) * 0.02

    ref = hidden_states[:, -1, :] @ weight.T + bias                      # [B, 1]
    out_3d = jax.block_until_ready(value_head_forward(hidden_states, weight, bias))
    out_2d = jax.block_until_ready(
        value_head_forward(hidden_states[:, -1, :], weight, bias))
    assert out_3d.shape == (B, 1) and out_2d.shape == (B, 1)
    assert jnp.allclose(out_3d, ref, atol=1e-5, rtol=1e-5)
    assert jnp.allclose(out_2d, ref, atol=1e-5, rtol=1e-5)

    # --- Multi-tile + ragged boundary: B=20 at 8-row tiles -> grid=(3,) ---
    B2 = 20
    hs2 = jax.random.normal(k_x2, (B2, S, H), dtype=jnp.float32)
    ref2 = hs2[:, -1, :] @ weight.T + bias
    out2 = jax.block_until_ready(value_head_forward(hs2, weight, bias, block_b=8))
    assert out2.shape == (B2, 1)
    assert jnp.allclose(out2, ref2, atol=1e-5, rtol=1e-5)

    # --- Fused last-token gather path (H*itemsize >= 512 B), multi-tile, f32 ---
    B3, S3, H3 = 16, 4, 256
    hs3 = jax.random.normal(k_x3, (B3, S3, H3), dtype=jnp.float32)
    w3 = jax.random.normal(k_w, (1, H3), dtype=jnp.float32) * 0.02
    ref3 = hs3[:, -1, :] @ w3.T + bias
    out3 = jax.block_until_ready(value_head_forward(hs3, w3, bias, block_b=8))
    assert out3.shape == (B3, 1)
    assert jnp.allclose(out3, ref3, atol=1e-5, rtol=1e-5)

    # --- bf16 inputs: kernel upcasts to f32 before multiply/accumulate ---
    hs3_bf, w3_bf = hs3.astype(jnp.bfloat16), w3.astype(jnp.bfloat16)
    ref3_bf = (hs3_bf[:, -1, :].astype(jnp.float32)
               @ w3_bf.T.astype(jnp.float32)) + bias
    out3_bf = jax.block_until_ready(value_head_forward(hs3_bf, w3_bf, bias))
    assert out3_bf.shape == (B3, 1)
    assert jnp.allclose(out3_bf.astype(jnp.float32), ref3_bf, atol=2e-2, rtol=2e-2)

    print("KERNEL_OK")
</pallas_src>

<mosaic_0001>
module attributes {stable_mosaic.version = 11 : i64} {
  func.func @_value_head_kernel(%arg0: i32, %arg1: memref<2x32xf32, #tpu.memory_space<vmem>>, %arg2: memref<1x32xf32, #tpu.memory_space<vmem>>, %arg3: memref<1xf32, #tpu.memory_space<smem>>, %arg4: memref<2x1xf32, #tpu.memory_space<vmem>>) attributes {dimension_semantics = [#tpu.dimension_semantics<parallel>], iteration_bounds = array<i64: 1>, scalar_prefetch = 0 : i64, scratch_operands = 0 : i64, tpu.core_type = #tpu.core_type<tc>, window_params = [{transform_indices = @transform_0, window_bounds = array<i64: 2, 32>}, {pipeline_mode = #tpu.pipeline_mode<synchronous>, transform_indices = @transform_1, window_bounds = array<i64: 1, 32>}, {transform_indices = @transform_2, window_bounds = array<i64: 1>}, {transform_indices = @transform_3, window_bounds = array<i64: 2, 1>}]} {
    %c0 = arith.constant 0 : index
    %c0_0 = arith.constant 0 : index
    %0 = vector.load %arg1[%c0, %c0_0] : memref<2x32xf32, #tpu.memory_space<vmem>>, vector<2x32xf32>
    %c0_1 = arith.constant 0 : index
    %c0_2 = arith.constant 0 : index
    %1 = vector.load %arg2[%c0_1, %c0_2] : memref<1x32xf32, #tpu.memory_space<vmem>>, vector<1x32xf32>
    %2 = vector.broadcast %1 : vector<1x32xf32> to vector<2x32xf32>
    %3 = arith.mulf %0, %2 : vector<2x32xf32>
    %cst = arith.constant dense<0.000000e+00> : vector<2xf32>
    %4 = vector.multi_reduction <add>, %3, %cst [1] : vector<2x32xf32> to vector<2xf32>
    %5 = vector.shape_cast %4 : vector<2xf32> to vector<2x1xf32>
    %c0_3 = arith.constant 0 : index
    %6 = memref.load %arg3[%c0_3] : memref<1xf32, #tpu.memory_space<smem>>
    %7 = vector.broadcast %6 : f32 to vector<2x1xf32>
    %8 = arith.addf %5, %7 : vector<2x1xf32>
    %c0_4 = arith.constant 0 : index
    %c0_5 = arith.constant 0 : index
    %9 = vector.load %arg4[%c0_4, %c0_5] : memref<2x1xf32, #tpu.memory_space<vmem>>, vector<2x1xf32>
    tpu.vector_store %arg4[%c0_4, %c0_5], %8 {strides = array<i32>} : memref<2x1xf32, #tpu.memory_space<vmem>>, vector<2x1xf32>,
    return
  }
  func.func @transform_0(%arg0: i32) -> (i32, i32) {
    %c0_i32 = arith.constant 0 : i32
    %c0_i32_0 = arith.constant 0 : i32
    return %arg0, %c0_i32 : i32, i32
  }
  func.func @transform_1(%arg0: i32) -> (i32, i32) {
    %c0_i32 = arith.constant 0 : i32
    %c0_i32_0 = arith.constant 0 : i32
    %c0_i32_1 = arith.constant 0 : i32
    return %c0_i32, %c0_i32_0 : i32, i32
  }
  func.func @transform_2(%arg0: i32) -> i32 {
    %c0_i32 = arith.constant 0 : i32
    %c0_i32_0 = arith.constant 0 : i32
    return %c0_i32 : i32
  }
  func.func @transform_3(%arg0: i32) -> (i32, i32) {
    %c0_i32 = arith.constant 0 : i32
    %c0_i32_0 = arith.constant 0 : i32
    return %arg0, %c0_i32 : i32, i32
  }
}

</mosaic_0001>

<bundles_post_ra>
// kernel: tpu_custom_call.1
= control target key start
LH: loop header
LB: loop body
LE: loop exit
PB: predicated region body
PF: predicated region fallthrough
CT: control target
= control target key end

     0   :  { %vm24_vm0 = vcmask 254976   ;;  %vm31_vm1 = vcmask 1024   ;;  %s70_s0 = inlined_call_operand.vmem [shape: f32[2,32], index: 0, kind: input, shape index: {}]   ;;  %s71_s1 = inlined_call_operand.vmem [shape: f32[1,32], index: 1, kind: input, shape index: {}]   ;;  %s72_s2 = inlined_call_operand.<no memory space> [shape: f32[1], index: 2, kind: input, shape index: {}]   ;;  %s73_s3 = inlined_call_operand.vmem [shape: f32[2,1], index: 3, kind: output, shape index: {}]  }
   0x1   :  { %v15_v0 = vld [vmem:[%s70_s0] sm:$0x3]  ;;  %v29_v4 = vstv %s72_s2 }
   0x2   :  { %v37_v1 = vld [vmem:[%s71_s1] ss:$0 sm:$0xff] }
   0x3   :  { %v23_v2 = vmul.f32 %v37_v1, %v15_v0 }
   0x5   :  { %v25_v3 = vsel %vm24_vm0, %v23_v2, 0.0 }
   0x6   :  { %26 = vadd.xlane.f32.xlu0 %v25_v3 }
  0x8f   :  { %v27_v5 = vpop.xlane.xlu0 %26 }
  0x90   :  { %v30_v6 = vadd.f32 %v29_v4, %v27_v5 }
  0x92   :  { %32 = vst.msk [vmem:[%s73_s3] sm:$0x3] %vm31_vm1, %v30_v6 }

</bundles_post_ra>
